<compile_context>
chip_gen: v7x
topology: tpu7x:2x2x1
jax: 0.10.0
libtpu: 0.0.40
codegen_flags: <defaults>
</compile_context>

<pallas_src>
import jax
import jax.numpy as jnp
from jax.experimental import pallas as pl
from jax.experimental.pallas import tpu as pltpu


def _round_up(x, m):
    return ((x + m - 1) // m) * m


# --------------------------------------------------------------------------
# Pallas kernel (one batch tile):
#   h     = relu(state @ W1 + b1)                      shared trunk
#   fused = h @ [Wd | Wc1h] + [bd | bc1]               one fused MXU pass
#   d_q   = fused[:, :DA]
#   hc    = relu(fused[:, DA:] + c_act @ Wc1a)
#   c_q   = sum(hc * wc2_row, -1) + bc2                VPU mul + lane reduce
#   out   = [d_q | c_q]                                single fused store
# --------------------------------------------------------------------------
def _make_q_kernel(c_act_start, da_eff, ca_eff):
    def kernel(state_ref, action_ref,
               w1_ref, b1_ref,
               w_head_ref, b_head_ref,
               wc1a_ref, wc2_ref, bc2_ref,
               out_ref):
        # shared trunk (bf16 MXU inputs, f32 accumulation)
        x = state_ref[...].astype(jnp.bfloat16)
        h = jnp.dot(x, w1_ref[...], preferred_element_type=jnp.float32)
        h = jnp.maximum(h + b1_ref[...], 0.0)

        # fused discrete head + continuous hidden pre-activation
        fused = jnp.dot(h.astype(jnp.bfloat16), w_head_ref[...],
                        preferred_element_type=jnp.float32) + b_head_ref[...]
        d_q = fused[:, :da_eff]

        # continuous head: slice c_action out of the packed action in-kernel
        c_act = action_ref[:, c_act_start:c_act_start + ca_eff].astype(jnp.bfloat16)
        hc = fused[:, da_eff:] + jnp.dot(c_act, wc1a_ref[...],
                                         preferred_element_type=jnp.float32)
        hc = jnp.maximum(hc, 0.0)

        # N=1 output head on the VPU/XLU instead of a 1-lane MXU matmul
        c_q = jnp.sum(hc * wc2_ref[...], axis=-1, keepdims=True) + bc2_ref[...]

        # single fused output store: [d_q | c_q]
        out_ref[...] = jnp.concatenate([d_q, c_q], axis=-1).astype(out_ref.dtype)

    return kernel


class ModelQ:
    """JAX/Pallas port of the ModelBaseQ contract (concrete dense Q head)."""

    def __init__(self, state_size, d_action_sizes, c_action_size,
                 is_target=False, hidden=32, seed=0, tile_rows=512):
        self.state_size = state_size
        self.d_action_sizes = list(d_action_sizes)
        self.c_action_size = c_action_size
        self.is_target = is_target
        self.hidden = hidden
        self.tile_rows = tile_rows          # 512 is a good v6e/v7x default; 256 on v5e
        self.d_action_summed = sum(self.d_action_sizes)
        self.da_eff = max(self.d_action_summed, 1)
        self.ca_eff = max(c_action_size, 1)

        # Deterministic synthetic parameters (not a checkpoint load).
        key = jax.random.PRNGKey(seed)
        ks = jax.random.split(key, 5)
        H, S = hidden, state_size
        DA, CA = self.da_eff, self.ca_eff

        def init(k, shape, scale=0.1):
            return (scale * jax.random.normal(k, shape)).astype(jnp.float32)

        w1 = init(ks[0], (S, H))
        b1 = jnp.zeros((1, H), jnp.float32)
        wd = init(ks[1], (H, DA))
        bd = jnp.zeros((1, DA), jnp.float32)
        wc1h = init(ks[2], (H, H))
        wc1a = init(ks[3], (CA, H))
        bc1 = jnp.zeros((1, H), jnp.float32)
        wc2 = init(ks[4], (H, 1))
        bc2 = jnp.zeros((1, 1), jnp.float32)

        # f32 copies for the pure-JAX reference.
        self.params_f32 = dict(w1=w1, b1=b1, wd=wd, bd=bd, wc1h=wc1h,
                               wc1a=wc1a, bc1=bc1, wc2=wc2, bc2=bc2)

        # Kernel parameters: fused head weight, bf16 matmul weights, f32 biases.
        self.kparams = dict(
            w1=w1.astype(jnp.bfloat16),
            b1=b1,
            w_head=jnp.concatenate([wd, wc1h], axis=1).astype(jnp.bfloat16),
            b_head=jnp.concatenate([bd, bc1], axis=1),
            wc1a=wc1a.astype(jnp.bfloat16),
            wc2_row=wc2.T,      # (1, H) f32, used in the VPU reduce
            bc2=bc2,
        )

    def __call__(self, state, action, obs_list=None):
        B = state.shape[0]
        S = self.state_size
        DA = self.d_action_summed
        CA = self.c_action_size
        DA_eff, CA_eff, H = self.da_eff, self.ca_eff, self.hidden

        if CA > 0:
            act_in = action
        else:
            # dummy continuous slice so kernel shapes stay static (output discarded)
            act_in = jnp.zeros((B, DA + CA_eff), state.dtype)
        W_act = act_in.shape[1]

        # batch tiling: TB rows per grid step (sublane multiple of 8), pad B up
        tb = self.tile_rows if B >= self.tile_rows else _round_up(B, 8)
        B_pad = _round_up(B, tb)
        if B_pad != B:
            state = jnp.pad(state, ((0, B_pad - B), (0, 0)))
            act_in = jnp.pad(act_in, ((0, B_pad - B), (0, 0)))
        grid = (B_pad // tb,)

        p = self.kparams
        kernel = _make_q_kernel(DA, DA_eff, CA_eff)
        out_w = DA_eff + 1

        st_bytes = jnp.dtype(state.dtype).itemsize
        ac_bytes = jnp.dtype(act_in.dtype).itemsize
        flops = 2 * B_pad * (S * H + H * (DA_eff + H) + CA_eff * H + H)
        bytes_accessed = int(
            B_pad * (S * st_bytes + W_act * ac_bytes + out_w * 4)
            + sum(int(v.size) * jnp.dtype(v.dtype).itemsize for v in p.values()))

        row_specs = [
            pl.BlockSpec((tb, S), lambda i: (i, 0)),
            pl.BlockSpec((tb, W_act), lambda i: (i, 0)),
        ]
        weight_arrays = (p["w1"], p["b1"], p["w_head"], p["b_head"],
                         p["wc1a"], p["wc2_row"], p["bc2"])
        weight_specs = [pl.BlockSpec(v.shape, lambda i: (0, 0))
                        for v in weight_arrays]

        out = pl.pallas_call(
            kernel,
            out_shape=jax.ShapeDtypeStruct((B_pad, out_w), jnp.float32),
            grid=grid,
            in_specs=row_specs + weight_specs,
            out_specs=pl.BlockSpec((tb, out_w), lambda i: (i, 0)),
            compiler_params=pltpu.CompilerParams(
                dimension_semantics=("parallel",),
                vmem_limit_bytes=32 * 1024 * 1024),
            cost_estimate=pl.CostEstimate(
                flops=flops, transcendentals=0, bytes_accessed=bytes_accessed),
        )(state, act_in, *weight_arrays)

        out = out[:B]
        d_q = out[:, :DA] if DA > 0 else None
        c_q = out[:, DA_eff:DA_eff + 1] if CA > 0 else None
        return d_q, c_q

    # Pure-JAX reference (mirrors the kernel's bf16-input / f32-accum math).
    def reference(self, state, action, obs_list=None):
        DA, CA = self.d_action_summed, self.c_action_size
        p = self.params_f32
        bf = jnp.bfloat16

        def mm(a, b):
            return jnp.dot(a.astype(bf), b.astype(bf),
                           preferred_element_type=jnp.float32)

        h = jnp.maximum(mm(state, p["w1"]) + p["b1"], 0.0)
        d_q = (mm(h, p["wd"]) + p["bd"]) if DA > 0 else None
        if CA > 0:
            c_action = action[:, DA:DA + CA]
            hc = jnp.maximum(mm(h, p["wc1h"]) + mm(c_action, p["wc1a"]) + p["bc1"], 0.0)
            c_q = jnp.sum(hc * p["wc2"].T, axis=-1, keepdims=True) + p["bc2"]
        else:
            c_q = None
        return d_q, c_q


if __name__ == "__main__":
    # Small shapes consistent with the module's forward signature.
    batch = 2
    state_size = 32
    d_action_sizes = [3, 4]       # sum = 7 discrete Q values
    c_action_size = 4

    key = jax.random.PRNGKey(0)
    k_state, k_daction, k_caction, k_obs = jax.random.split(key, 4)

    state = jax.random.normal(k_state, (batch, state_size), jnp.float32)
    # packed action = [one-hot discrete actions ; continuous action]
    d_parts = []
    sub_key = k_daction
    for n in d_action_sizes:
        sub_key, sub = jax.random.split(sub_key)
        idx = jax.random.randint(sub, (batch,), 0, n)
        d_parts.append(jax.nn.one_hot(idx, n, dtype=jnp.float32))
    c_action = jnp.tanh(jax.random.normal(k_caction, (batch, c_action_size), jnp.float32))
    action = jnp.concatenate(d_parts + [c_action], axis=-1)
    obs_list = [jax.random.normal(k_obs, (batch, 8), jnp.float32)]  # unused by Q head

    model = ModelQ(state_size, d_action_sizes, c_action_size, is_target=False)

    d_q, c_q = model(state, action, obs_list)
    jax.block_until_ready((d_q, c_q))

    d_q_ref, c_q_ref = model.reference(state, action, obs_list)
    assert d_q.shape == (batch, sum(d_action_sizes))
    assert c_q.shape == (batch, 1)
    assert jnp.allclose(d_q, d_q_ref, atol=1e-3, rtol=1e-3)
    assert jnp.allclose(c_q, c_q_ref, atol=1e-3, rtol=1e-3)

    print("KERNEL_OK")
</pallas_src>

<mosaic_0001>
module attributes {stable_mosaic.version = 11 : i64} {
  func.func @kernel(%arg0: i32, %arg1: memref<8x32xf32, #tpu.memory_space<vmem>>, %arg2: memref<8x11xf32, #tpu.memory_space<vmem>>, %arg3: memref<32x32xbf16, #tpu.memory_space<vmem>>, %arg4: memref<1x32xf32, #tpu.memory_space<vmem>>, %arg5: memref<32x39xbf16, #tpu.memory_space<vmem>>, %arg6: memref<1x39xf32, #tpu.memory_space<vmem>>, %arg7: memref<4x32xbf16, #tpu.memory_space<vmem>>, %arg8: memref<1x32xf32, #tpu.memory_space<vmem>>, %arg9: memref<1x1xf32, #tpu.memory_space<vmem>>, %arg10: memref<8x8xf32, #tpu.memory_space<vmem>>) attributes {dimension_semantics = [#tpu.dimension_semantics<parallel>], iteration_bounds = array<i64: 1>, scalar_prefetch = 0 : i64, scratch_operands = 0 : i64, tpu.core_type = #tpu.core_type<tc>, window_params = [{transform_indices = @transform_0, window_bounds = array<i64: 8, 32>}, {transform_indices = @transform_1, window_bounds = array<i64: 8, 11>}, {pipeline_mode = #tpu.pipeline_mode<synchronous>, transform_indices = @transform_2, window_bounds = array<i64: 32, 32>}, {pipeline_mode = #tpu.pipeline_mode<synchronous>, transform_indices = @transform_3, window_bounds = array<i64: 1, 32>}, {pipeline_mode = #tpu.pipeline_mode<synchronous>, transform_indices = @transform_4, window_bounds = array<i64: 32, 39>}, {pipeline_mode = #tpu.pipeline_mode<synchronous>, transform_indices = @transform_5, window_bounds = array<i64: 1, 39>}, {pipeline_mode = #tpu.pipeline_mode<synchronous>, transform_indices = @transform_6, window_bounds = array<i64: 4, 32>}, {pipeline_mode = #tpu.pipeline_mode<synchronous>, transform_indices = @transform_7, window_bounds = array<i64: 1, 32>}, {pipeline_mode = #tpu.pipeline_mode<synchronous>, transform_indices = @transform_8, window_bounds = array<i64: 1, 1>}, {transform_indices = @transform_9, window_bounds = array<i64: 8, 8>}]} {
    %c0 = arith.constant 0 : index
    %c0_0 = arith.constant 0 : index
    %0 = vector.load %arg1[%c0, %c0_0] : memref<8x32xf32, #tpu.memory_space<vmem>>, vector<8x32xf32>
    %1 = arith.truncf %0 : vector<8x32xf32> to vector<8x32xbf16>
    %c0_1 = arith.constant 0 : index
    %c0_2 = arith.constant 0 : index
    %2 = vector.load %arg3[%c0_1, %c0_2] : memref<32x32xbf16, #tpu.memory_space<vmem>>, vector<32x32xbf16>
    %cst = arith.constant dense<0.000000e+00> : vector<8x32xf32>
    %3 = tpu.matmul %1, %2, %cst {dimension_numbers = #tpu.dot_dimension_numbers<[1], [0], [0], [1], [0, 0, 1, 1], [], []>} : vector<8x32xbf16>, vector<32x32xbf16>, vector<8x32xf32> -> vector<8x32xf32>
    %c0_3 = arith.constant 0 : index
    %c0_4 = arith.constant 0 : index
    %4 = vector.load %arg4[%c0_3, %c0_4] : memref<1x32xf32, #tpu.memory_space<vmem>>, vector<1x32xf32>
    %5 = vector.broadcast %4 : vector<1x32xf32> to vector<8x32xf32>
    %6 = arith.addf %3, %5 : vector<8x32xf32>
    %cst_5 = arith.constant 0.000000e+00 : f32
    %7 = vector.broadcast %cst_5 : f32 to vector<8x32xf32>
    %8 = arith.maximumf %6, %7 : vector<8x32xf32>
    %9 = arith.truncf %8 : vector<8x32xf32> to vector<8x32xbf16>
    %c0_6 = arith.constant 0 : index
    %c0_7 = arith.constant 0 : index
    %10 = vector.load %arg5[%c0_6, %c0_7] : memref<32x39xbf16, #tpu.memory_space<vmem>>, vector<32x39xbf16>
    %cst_8 = arith.constant dense<0.000000e+00> : vector<8x39xf32>
    %11 = tpu.matmul %9, %10, %cst_8 {dimension_numbers = #tpu.dot_dimension_numbers<[1], [0], [0], [1], [0, 0, 1, 1], [], []>} : vector<8x32xbf16>, vector<32x39xbf16>, vector<8x39xf32> -> vector<8x39xf32>
    %c0_9 = arith.constant 0 : index
    %c0_10 = arith.constant 0 : index
    %12 = vector.load %arg6[%c0_9, %c0_10] : memref<1x39xf32, #tpu.memory_space<vmem>>, vector<1x39xf32>
    %13 = vector.broadcast %12 : vector<1x39xf32> to vector<8x39xf32>
    %14 = arith.addf %11, %13 : vector<8x39xf32>
    %15 = vector.extract_strided_slice %14 {offsets = [0, 0], sizes = [8, 7], strides = [1, 1]} : vector<8x39xf32> to vector<8x7xf32>
    %c0_11 = arith.constant 0 : index
    %c7 = arith.constant 7 : index
    %16 = vector.load %arg2[%c0_11, %c7] : memref<8x11xf32, #tpu.memory_space<vmem>>, vector<8x4xf32>
    %17 = arith.truncf %16 : vector<8x4xf32> to vector<8x4xbf16>
    %18 = vector.extract_strided_slice %14 {offsets = [0, 7], sizes = [8, 32], strides = [1, 1]} : vector<8x39xf32> to vector<8x32xf32>
    %c0_12 = arith.constant 0 : index
    %c0_13 = arith.constant 0 : index
    %19 = vector.load %arg7[%c0_12, %c0_13] : memref<4x32xbf16, #tpu.memory_space<vmem>>, vector<4x32xbf16>
    %cst_14 = arith.constant dense<0.000000e+00> : vector<8x32xf32>
    %20 = tpu.matmul %17, %19, %cst_14 {dimension_numbers = #tpu.dot_dimension_numbers<[1], [0], [0], [1], [0, 0, 1, 1], [], []>} : vector<8x4xbf16>, vector<4x32xbf16>, vector<8x32xf32> -> vector<8x32xf32>
    %21 = arith.addf %18, %20 : vector<8x32xf32>
    %cst_15 = arith.constant 0.000000e+00 : f32
    %22 = vector.broadcast %cst_15 : f32 to vector<8x32xf32>
    %23 = arith.maximumf %21, %22 : vector<8x32xf32>
    %c0_16 = arith.constant 0 : index
    %c0_17 = arith.constant 0 : index
    %24 = vector.load %arg8[%c0_16, %c0_17] : memref<1x32xf32, #tpu.memory_space<vmem>>, vector<1x32xf32>
    %25 = vector.broadcast %24 : vector<1x32xf32> to vector<8x32xf32>
    %26 = arith.mulf %23, %25 : vector<8x32xf32>
    %cst_18 = arith.constant dense<0.000000e+00> : vector<8xf32>
    %27 = vector.multi_reduction <add>, %26, %cst_18 [1] : vector<8x32xf32> to vector<8xf32>
    %28 = vector.shape_cast %27 : vector<8xf32> to vector<8x1xf32>
    %c0_19 = arith.constant 0 : index
    %c0_20 = arith.constant 0 : index
    %29 = vector.load %arg9[%c0_19, %c0_20] : memref<1x1xf32, #tpu.memory_space<vmem>>, vector<1x1xf32>
    %30 = vector.broadcast %29 : vector<1x1xf32> to vector<8x1xf32>
    %31 = arith.addf %28, %30 : vector<8x1xf32>
    %32 = tpu.concatenate %15, %31 in 1 : vector<8x7xf32>, vector<8x1xf32> -> vector<8x8xf32>
    %c0_21 = arith.constant 0 : index
    %c0_22 = arith.constant 0 : index
    %33 = vector.load %arg10[%c0_21, %c0_22] : memref<8x8xf32, #tpu.memory_space<vmem>>, vector<8x8xf32>
    tpu.vector_store %arg10[%c0_21, %c0_22], %32 {strides = array<i32>} : memref<8x8xf32, #tpu.memory_space<vmem>>, vector<8x8xf32>,
    return
  }
  func.func @transform_0(%arg0: i32) -> (i32, i32) {
    %c0_i32 = arith.constant 0 : i32
    %c0_i32_0 = arith.constant 0 : i32
    return %arg0, %c0_i32 : i32, i32
  }
  func.func @transform_1(%arg0: i32) -> (i32, i32) {
    %c0_i32 = arith.constant 0 : i32
    %c0_i32_0 = arith.constant 0 : i32
    return %arg0, %c0_i32 : i32, i32
  }
  func.func @transform_2(%arg0: i32) -> (i32, i32) {
    %c0_i32 = arith.constant 0 : i32
    %c0_i32_0 = arith.constant 0 : i32
    %c0_i32_1 = arith.constant 0 : i32
    return %c0_i32, %c0_i32_0 : i32, i32
  }
  func.func @transform_3(%arg0: i32) -> (i32, i32) {
    %c0_i32 = arith.constant 0 : i32
    %c0_i32_0 = arith.constant 0 : i32
    %c0_i32_1 = arith.constant 0 : i32
    return %c0_i32, %c0_i32_0 : i32, i32
  }
  func.func @transform_4(%arg0: i32) -> (i32, i32) {
    %c0_i32 = arith.constant 0 : i32
    %c0_i32_0 = arith.constant 0 : i32
    %c0_i32_1 = arith.constant 0 : i32
    return %c0_i32, %c0_i32_0 : i32, i32
  }
  func.func @transform_5(%arg0: i32) -> (i32, i32) {
    %c0_i32 = arith.constant 0 : i32
    %c0_i32_0 = arith.constant 0 : i32
    %c0_i32_1 = arith.constant 0 : i32
    return %c0_i32, %c0_i32_0 : i32, i32
  }
  func.func @transform_6(%arg0: i32) -> (i32, i32) {
    %c0_i32 = arith.constant 0 : i32
    %c0_i32_0 = arith.constant 0 : i32
    %c0_i32_1 = arith.constant 0 : i32
    return %c0_i32, %c0_i32_0 : i32, i32
  }
  func.func @transform_7(%arg0: i32) -> (i32, i32) {
    %c0_i32 = arith.constant 0 : i32
    %c0_i32_0 = arith.constant 0 : i32
    %c0_i32_1 = arith.constant 0 : i32
    return %c0_i32, %c0_i32_0 : i32, i32
  }
  func.func @transform_8(%arg0: i32) -> (i32, i32) {
    %c0_i32 = arith.constant 0 : i32
    %c0_i32_0 = arith.constant 0 : i32
    %c0_i32_1 = arith.constant 0 : i32
    return %c0_i32, %c0_i32_0 : i32, i32
  }
  func.func @transform_9(%arg0: i32) -> (i32, i32) {
    %c0_i32 = arith.constant 0 : i32
    %c0_i32_0 = arith.constant 0 : i32
    return %arg0, %c0_i32 : i32, i32
  }
}

</mosaic_0001>

<bundles_post_ra>
// kernel: tpu_custom_call.1
= control target key start
LH: loop header
LB: loop body
LE: loop exit
PB: predicated region body
PF: predicated region fallthrough
CT: control target
= control target key end

     0   :  { %s656_s0 = inlined_call_operand.hbm [shape: f32[8,32], index: 0, kind: input, shape index: {}]   ;;  %s657_s1 = inlined_call_operand.hbm [shape: f32[8,11], index: 1, kind: input, shape index: {}]   ;;  %s658_s2 = inlined_call_operand.hbm [shape: bf16[32,32], index: 2, kind: input, shape index: {}]   ;;  %s659_s3 = inlined_call_operand.hbm [shape: f32[1,32], index: 3, kind: input, shape index: {}]   ;;  %s660_s4 = inlined_call_operand.vmem [shape: bf16[32,39], index: 4, kind: input, shape index: {}]   ;;  %s661_s5 = inlined_call_operand.vmem [shape: f32[1,39], index: 5, kind: input, shape index: {}]   ;;  %s662_s6 = inlined_call_operand.vmem [shape: bf16[4,32], index: 6, kind: input, shape index: {}]   ;;  %s663_s7 = inlined_call_operand.vmem [shape: f32[1,32], index: 7, kind: input, shape index: {}]   ;;  %s664_s8 = inlined_call_operand.<no memory space> [shape: f32[1,1], index: 8, kind: input, shape index: {}]   ;;  %s665_s9 = inlined_call_operand.hbm [shape: f32[8,8], index: 9, kind: output, shape index: {}]  }
   0x1   :  { %v14_v0 = vstv %s664_s8 }
   0x2   :  { %15 = vst [vmem:[#allocation2] sm:$0x1] %v14_v0 }
   0x3   :  { %16 = vsyncpa [#allocation4], 0 }
   0x4   :  { %17 = vsyncpa [#allocation7], 0 }
   0x5   :  { %18 = vsyncpa [#allocation10], 0 }
   0x6   :  { %19 = vsyncpa [#allocation5], 0  ;;  %s506_s11 = smov [#allocation6]   ;;  %s507_s13 = smov [#allocation3]  }
   0x7   :  { %s36_s12 = sshll.u32 %s506_s11, 4  ;;  %s26_s14 = sshll.u32 %s507_s13, 4  ;;  %s37_s12 = int_to_ptr.vmem [resolvable:$true] %s36_s12  ;;  %s27_s14 = int_to_ptr.vmem [resolvable:$true] %s26_s14 }
   0x8   :  { %s388_s17 = scalar_lea.hbm %s657_s1, 128 }
   0x9   :  { %p389_p0 = scmp.ne.s32.totalorder %s657_s1, %s388_s17  ;;  %p392_p1 = scmp.lt.u32.totalorder %s388_s17, %s657_s1 }
   0xb   :  { %p394_p2 = pnand %p392_p1, %p389_p0 }
   0xd   :  { %397 = shalt.err (!%p394_p2)
}
   0xe   :  { %s398_s21 = scalar_lea.vmem %s37_s12, 128  ;;  %p403_p4 = scmp.lt.s32.totalorder %s37_s12, %s37_s12 }
   0xf   :  { %p399_p3 = scmp.ne.s32.totalorder %s37_s12, %s398_s21  ;;  %p404_p5 = scmp.lt.s32.totalorder %s398_s21, %s398_s21 }
  0x11   :  { %p405_p6 = por %p404_p5, %p403_p4 }
  0x13   :  { %p406_p7 = pnand %p405_p6, %p399_p3 }
  0x15   :  { %409 = shalt.err (!%p406_p7)
}
  0x16   :  { %39 = dma.hbm_to_vmem [thread:$0]  %s657_s1, 128, %s37_s12, [#allocation7]  }
  0x17   :  { %s410_s26 = scalar_lea.hbm %s656_s0, 128 }
  0x18   :  { %p411_p8 = scmp.ne.s32.totalorder %s656_s0, %s410_s26  ;;  %p414_p9 = scmp.lt.u32.totalorder %s410_s26, %s656_s0 }
  0x1a   :  { %p416_p10 = pnand %p414_p9, %p411_p8 }
  0x1c   :  { %419 = shalt.err (!%p416_p10)
}
  0x1d   :  { %s420_s10 = scalar_lea.vmem %s27_s14, 128  ;;  %p425_p12 = scmp.lt.s32.totalorder %s27_s14, %s27_s14 }
  0x1e   :  { %p421_p11 = scmp.ne.s32.totalorder %s27_s14, %s420_s10  ;;  %p426_p13 = scmp.lt.s32.totalorder %s420_s10, %s420_s10 }
  0x20   :  { %p427_p0 = por %p426_p13, %p425_p12 }
  0x22   :  { %p428_p1 = pnand %p427_p0, %p421_p11 }
  0x24   :  { %431 = shalt.err (!%p428_p1)
}
  0x25   :  { %29 = dma.hbm_to_vmem [thread:$0]  %s656_s0, 128, %s27_s14, [#allocation4]  }
  0x26   :  { %s508_s12 = smov [#allocation8]   ;;  %s432_s17 = scalar_lea.hbm %s658_s2, 256 }
  0x27   :  { %s45_s13 = sshll.u32 %s508_s12, 4  ;;  %p433_p2 = scmp.ne.s32.totalorder %s658_s2, %s432_s17  ;;  %s46_s13 = int_to_ptr.vmem [resolvable:$true] %s45_s13 }
  0x28   :  { %p436_p3 = scmp.lt.u32.totalorder %s432_s17, %s658_s2 }
  0x2a   :  { %p438_p4 = pnand %p436_p3, %p433_p2 }
  0x2c   :  { %441 = shalt.err (!%p438_p4)
}
  0x2d   :  { %s442_s21 = scalar_lea.vmem %s46_s13, 256  ;;  %p447_p6 = scmp.lt.s32.totalorder %s46_s13, %s46_s13 }
  0x2e   :  { %p443_p5 = scmp.ne.s32.totalorder %s46_s13, %s442_s21  ;;  %p448_p7 = scmp.lt.s32.totalorder %s442_s21, %s442_s21 }
  0x30   :  { %p449_p8 = por %p448_p7, %p447_p6 }
  0x32   :  { %p450_p9 = pnand %p449_p8, %p443_p5 }
  0x34   :  { %453 = shalt.err (!%p450_p9)
}
  0x35   :  { %s509_s0 = smov 64   ;;  %s510_s14 = smov 4  }
  0x36   :  { %51 = dma.hbm_to_vmem [thread:$0]  %s658_s2, 256, %s46_s13, [#allocation7], %s509_s0, %s509_s0, %s510_s14  }
  0x37   :  { %s511_s24 = smov [#allocation9]   ;;  %s454_s28 = scalar_lea.hbm %s659_s3, 16 }
  0x38   :  { %s58_s25 = sshll.u32 %s511_s24, 4  ;;  %p455_p10 = scmp.ne.s32.totalorder %s659_s3, %s454_s28  ;;  %s59_s25 = int_to_ptr.vmem [resolvable:$true] %s58_s25 }
  0x39   :  { %p458_p11 = scmp.lt.u32.totalorder %s454_s28, %s659_s3 }
  0x3b   :  { %p460_p12 = pnand %p458_p11, %p455_p10 }
  0x3d   :  { %463 = shalt.err (!%p460_p12)
}
  0x3e   :  { %s464_s11 = scalar_lea.vmem %s59_s25, 16  ;;  %s468_s2 = scalar_lea.vmem %s59_s25, 32 }
  0x3f   :  { %p465_p13 = scmp.ne.s32.totalorder %s59_s25, %s464_s11  ;;  %p469_p0 = scmp.lt.s32.totalorder %s59_s25, %s59_s25 }
  0x40   :  { %p470_p1 = scmp.lt.s32.totalorder %s468_s2, %s464_s11 }
  0x42   :  { %p471_p2 = por %p470_p1, %p469_p0 }
  0x44   :  { %p472_p3 = pnand %p471_p2, %p465_p13 }
  0x46   :  { %475 = shalt.err (!%p472_p3)
}
  0x47   :  { %61 = dma.hbm_to_vmem [thread:$0]  %s659_s3, 16, %s59_s25, [#allocation10]  }
  0x48   :  { %498 = dma.done.wait [#allocation4], 128  }
  0x49   :  { %499 = vsyncadd [#allocation4], 4294967168 }
  0x4a   :  { %500 = dma.done.wait [#allocation7], 384  }
  0x4b   :  { %501 = vsyncadd [#allocation7], 4294966912 }
  0x4c   :  { %502 = dma.done.wait [#allocation10], 16  }
  0x4d   :  { %503 = vsyncadd [#allocation10], 4294967280  ;;  %v512_v1 = vmov 0.0   ;;  %vm513_vm0 = vmmov 0   ;;  %v222_v2 = vld [vmem:[#allocation6] sm:$0xff]  ;;  %v384_v4 = vld [vmem:[#allocation8] sm:$0xff]  }
  0x4e   :  { %351 = vmatprep.subr.bf16.mxu0 %v512_v1  ;;  %355 = vmatprep.mubr.msk.bf16.mxu0 %vm513_vm0, %v512_v1  ;;  %v223_v3 = vpack.c.bf16 %v222_v2, %v222_v2  ;;  %s514_s15 = smov 121   ;;  %v385_v5 = vld [vmem:[#allocation8 + $0x8] sm:$0xff]   ;;  %v85_v6 = vld [vmem:[#allocation3] sm:$0xff]  ;;  %vm232_vm1 = vcmask 1041408   ;;  %vm110_vm2 = vcmask 261120   ;;  %vm228_vm3 = vcmask 31744  }
  0x4f   :  { %359 = vmatprep.subr.bf16.mxu1 %v512_v1  ;;  %363 = vmatprep.mubr.msk.bf16.mxu1 %vm513_vm0, %v512_v1  ;;  %v224_v7 = vld [vmem:[%s662_s6] sm:$0x3]  ;;  %v86_v8 = vpack.c.bf16 %v85_v6, %v85_v6  ;;  %v387_v11 = vld [vmem:[%s660_s4 + $0x8] sm:$0xff]   ;;  %s515_s21 = smov 7   ;;  %vm311_vm4 = vcmask 56320   ;;  %vm313_vm5 = vcmask 64512  }
  0x50   :  { %226 = vrot.lane.b32.xlu0 %v223_v3, %s514_s15  ;;  %352 = vmatpush3.bf16.msra.mxu0 %v384_v4  ;;  %v234_v9 = vsel %vm232_vm1, %v224_v7, 0  ;;  %v386_v10 = vld [vmem:[%s660_s4] sm:$0xff]  }
  0x51   :  { %353 = vmatprep.subr.bf16.mxu0 %v512_v1  ;;  %360 = vmatpush3.bf16.msra.mxu1 %v386_v10  ;;  %v341_v13 = vld [vmem:[%s663_s7] ss:$0 sm:$0xff]  ;;  %v332_v14 = vld [vmem:[#allocation9] ss:$0 sm:$0xff] }
  0x52   :  { %361 = vmatprep.subr.bf16.mxu1 %v512_v1  ;;  %288 = vrot.lane.b32.xlu1 %v341_v13, %s515_s21  ;;  %v336_v26 = vld [vmem:[%s661_s5] ss:$0 sm:$0xff]  ;;  %s516_s5 = smov [#allocation11]  }
  0x53   :  { %v342_v39 = vld [vmem:[#allocation2] ss:$0 sm:$0xff]  ;;  %s321_s0 = sshll.u32 %s516_s5, 4  ;;  %s322_s0 = int_to_ptr.vmem [resolvable:$true] %s321_s0 }
  0x54   :  { %354 = vmatpush3.bf16.msra.mxu0 %v385_v5  ;;  %s476_s14 = scalar_lea.vmem %s322_s0, 128  ;;  %p481_p5 = scmp.lt.s32.totalorder %s322_s0, %s322_s0 }
  0x55   :  { %367 = vmatprep.subr.bf16.mxu0 %v512_v1  ;;  %362 = vmatpush3.bf16.msra.mxu1 %v387_v11  ;;  %p477_p4 = scmp.ne.s32.totalorder %s322_s0, %s476_s14  ;;  %p482_p6 = scmp.lt.s32.totalorder %s476_s14, %s476_s14 }
  0x57   :  { %356 = vmatmul.mubr.msk.bf16.vlgmr.msra.gmra.mrb[0].mxu0 %vm110_vm2, %v86_v8  ;;  %p483_p7 = por %p482_p6, %p481_p5 }
  0x58   :  { %368 = vmatpush3.bf16.msra.mxu0 %v234_v9  ;;  %369 = vmatprep.mubr.msk.bf16.mxu0 %vm513_vm0, %v512_v1 }
  0x59   :  { %p484_p8 = pnand %p483_p7, %p477_p4 }
  0xc2   :  { %v227_v12 = vpop.permute.xlu0 %226 }
  0xc3   :  { %370 = vmatmul.mubr.msk.bf16.vlgmr.msra.gmra.mrb[4].mxu0 %vm228_vm3, %v227_v12 }
  0xc4   :  { %v289_v34 = vpop.permute.xlu1 %288 }
 0x12a   :  { %v148_v15 = vpop.f32.mrb[0].mxu0 }
 0x12b   :  { %v149_v16 = vadd.f32 %v332_v14, %v148_v15  ;;  %v357_v17 = vpop.f32.mrb[1].mxu0 }
 0x12c   :  { %v151_v18 = vpop.f32.mrb[2].mxu0 }
 0x12d   :  { %v154_v19 = vmax.f32 %v149_v16, 0.0  ;;  %v358_v20 = vpop.f32.mrb[3].mxu0 }
 0x12f   :  { %v155_v21 = vpack.c.bf16 %v154_v19, %v154_v19 }
 0x131   :  { %364 = vmatmul.mubr.msk.bf16.vlgmr.msra.gmra.mrb[0].mxu1 %vm110_vm2, %v155_v21 }
 0x196   :  { %v270_v22 = vpop.f32.mrb[4].mxu0 }
 0x197   :  { %277 = vrot.lane.b32.xlu0 %v270_v22, %s515_s21  ;;  %v371_v23 = vpop.f32.mrb[5].mxu0 }
 0x198   :  { %v273_v24 = vpop.f32.mrb[6].mxu0 }
 0x199   :  { %v372_v25 = vpop.f32.mrb[7].mxu0 }
 0x204   :  { %v216_v27 = vpop.f32.mrb[0].mxu1 }
 0x205   :  { %v365_v28 = vpop.f32.mrb[1].mxu1  ;;  %v217_v29 = vadd.f32 %v336_v26, %v216_v27 }
 0x206   :  { %v219_v30 = vpop.f32.mrb[2].mxu1 }
 0x207   :  { %v366_v31 = vpop.f32.mrb[3].mxu1 }
 0x209   :  { %v278_v32 = vpop.permute.xlu0 %277 }
 0x20a   :  { %v280_v33 = vadd.f32 %v278_v32, %v217_v29 }
 0x20c   :  { %v281_v35 = vmax.f32 %v280_v33, 0.0 }
 0x20e   :  { %v291_v36 = vmul.f32 %v289_v34, %v281_v35 }
 0x210   :  { %293 = vrot.lane.b32.xlu1 %v291_v36, %s514_s15 }
 0x282   :  { %v294_v37 = vpop.permute.xlu1 %293 }
 0x283   :  { %v296_v38 = vsel %vm110_vm2, %v294_v37, 0.0 }
 0x284   :  { %297 = vadd.xlane.f32.xlu0 %v296_v38 }
 0x311   :  { %v298_v40 = vpop.xlane.xlu0 %297 }
 0x312   :  { %v306_v41 = vadd.f32 %v342_v39, %v298_v40 }
 0x314   :  { %308 = vrot.lane.b32.xlu1 %v306_v41, %s515_s21 }
 0x386   :  { %v309_v42 = vpop.permute.xlu1 %308 }
 0x387   :  { %v312_v43 = vsel %vm311_vm4, %v217_v29, %v309_v42 }
 0x388   :  { %314 = vst.msk [vmem:[#allocation11] sm:$0xff] %vm313_vm5, %v312_v43 }
 0x389   :  { %487 = shalt.err (!%p484_p8)
}
 0x38a   :  { %s488_s24 = scalar_lea.hbm %s665_s9, 128 }
 0x38b   :  { %p489_p9 = scmp.ne.s32.totalorder %s665_s9, %s488_s24  ;;  %p492_p10 = scmp.lt.u32.totalorder %s488_s24, %s665_s9 }
 0x38d   :  { %p494_p11 = pnand %p492_p10, %p489_p9 }
 0x38f   :  { %497 = shalt.err (!%p494_p11)
}
 0x390   :  { %324 = dma.vmem_to_hbm [thread:$0]  %s322_s0, 128, %s665_s9, [#allocation5]  }
 0x391   :  { %504 = dma.done.wait [#allocation5], 128  }
 0x392   :  { %505 = vsyncadd [#allocation5], 4294967168 }
 0x393   :  { %328 = vsyncpa [#allocation4], 1 }
 0x394   :  { %329 = vsyncpa [#allocation7], 1 }
 0x395   :  { %330 = vsyncpa [#allocation10], 1 }
 0x396   :  { %331 = vsyncpa [#allocation5], 1 }

</bundles_post_ra>
